<compile_context>
chip_gen: v7x
topology: tpu7x:2x2x1
jax: 0.10.0
libtpu: 0.0.40
codegen_flags: <defaults>
</compile_context>

<pallas_src>
import functools
import math

import jax
import jax.numpy as jnp
from jax import lax
from jax.experimental import pallas as pl
from jax.experimental.pallas import tpu as pltpu


def _round_up(x, m):
    return (x + m - 1) // m * m


def _emb_sum_kernel(idx_ref, tab_ref, o_ref, *, F, V):
    # idx_ref : VMEM (TB, F) int32   per-tile lookup indices
    # tab_ref : VMEM (F, V, D)       stacked, zero-padded tables (resident)
    # o_ref   : VMEM (TB, D)         output tile
    TB, D = o_ref.shape

    idx = idx_ref[...]                                        # (TB, F) int32
    # One shared column iota for every feature (hoisted: JAX does not CSE
    # broadcast_in_dim, so building it inside the loop would emit F copies).
    col = lax.broadcasted_iota(jnp.int32, (TB, V), 1)

    acc = jnp.zeros((TB, D), jnp.float32)
    for f in range(F):                                        # F small, static
        # One-hot row selector.  Out-of-range / negative indices match no
        # column -> zero contribution (matches the torch one-hot view of the
        # sum; no aliasing to a real row, unlike a clamp).
        oh = (col == idx[:, f:f + 1]).astype(tab_ref.dtype)   # (TB, V)
        acc = acc + jnp.dot(oh, tab_ref[f],
                            preferred_element_type=jnp.float32)

    o_ref[...] = acc.astype(o_ref.dtype)


def embedding_layer_sum(x_idx, tables, *, tb=256):
    """x_idx: int [..., F]; tables: [F, V_max, D] -> [..., D] (tables.dtype)."""
    *lead, F = x_idx.shape
    Ft, V, D = tables.shape
    assert Ft == F

    B = math.prod(lead) if lead else 1
    x2 = x_idx.reshape(B, F).astype(jnp.int32)                # flatten leading dims

    # Large batch tile to amortize per-grid-step overhead, but never larger
    # than the (8-aligned) batch itself.  Pad the batch to a tile multiple;
    # pad rows (index 0) are discarded after the call.
    tb_eff = min(_round_up(tb, 8), _round_up(B, 8))
    Bp = _round_up(B, tb_eff)
    if Bp != B:
        x2 = jnp.pad(x2, ((0, Bp - B), (0, 0)))

    kernel = functools.partial(_emb_sum_kernel, F=F, V=V)

    out = pl.pallas_call(
        kernel,
        out_shape=jax.ShapeDtypeStruct((Bp, D), tables.dtype),
        grid_spec=pltpu.PrefetchScalarGridSpec(
            num_scalar_prefetch=0,
            grid=(Bp // tb_eff,),                             # batch tiles only
            in_specs=[
                # per-tile indices (last dim == full F, second-last % 8 == 0)
                pl.BlockSpec((tb_eff, F), lambda bt: (bt, 0)),
                # full stacked table, constant block index -> DMA'd once,
                # resident in VMEM for the whole grid
                pl.BlockSpec((F, V, D), lambda bt: (0, 0, 0)),
            ],
            out_specs=pl.BlockSpec((tb_eff, D), lambda bt: (bt, 0)),
        ),
        compiler_params=pltpu.CompilerParams(
            dimension_semantics=("parallel",),                # v7x: 2nd TC
        ),
    )(x2, tables)

    return out[:B].reshape(tuple(lead) + (D,))


if __name__ == "__main__":
    key = jax.random.PRNGKey(0)

    # emb_szs analogous to the PyTorch module: (in_sz, out_sz) pairs with a
    # shared out_sz (required for mode='sum').
    D = 32
    emb_szs = [(7, D), (11, D), (5, D), (13, D)]
    F = len(emb_szs)
    B = 16
    V_max = 16  # pad vocabularies to a common size

    # Deterministic parameter init (nn.Embedding default ~ N(0, 1)),
    # zero-padded to V_max and stacked into [F, V_max, D].
    keys = jax.random.split(key, F + 1)
    tables = []
    for i, (in_sz, out_sz) in enumerate(emb_szs):
        w = jax.random.normal(keys[i], (in_sz, out_sz), dtype=jnp.float32)
        w = jnp.pad(w, ((0, V_max - in_sz), (0, 0)))
        tables.append(w)
    tables = jnp.stack(tables, axis=0)                        # [F, V_max, D]

    # Deterministic integer inputs, one column per feature, each within range.
    idx_cols = []
    ikeys = jax.random.split(keys[-1], F)
    for i, (in_sz, _) in enumerate(emb_szs):
        idx_cols.append(
            jax.random.randint(ikeys[i], (B,), 0, in_sz, dtype=jnp.int32))
    x_idx = jnp.stack(idx_cols, axis=-1)                      # [B, F]

    out = embedding_layer_sum(x_idx, tables)
    out = jax.block_until_ready(out)

    # Pure-JAX reference: per-feature gather + sum over features.
    ref = jnp.zeros((B, D), jnp.float32)
    for i in range(F):
        ref = ref + jnp.take(tables[i], x_idx[:, i], axis=0)

    assert out.shape == (B, D) and out.dtype == jnp.float32
    assert jnp.allclose(out, ref, atol=1e-5, rtol=1e-5), "mismatch vs reference"
    print("KERNEL_OK")
</pallas_src>

<mosaic_0001>
module attributes {stable_mosaic.version = 11 : i64} {
  func.func @_emb_sum_kernel(%arg0: i32, %arg1: memref<16x4xi32, #tpu.memory_space<vmem>>, %arg2: memref<4x16x32xf32, #tpu.memory_space<vmem>>, %arg3: memref<16x32xf32, #tpu.memory_space<vmem>>) attributes {dimension_semantics = [#tpu.dimension_semantics<parallel>], iteration_bounds = array<i64: 1>, scalar_prefetch = 0 : i64, scratch_operands = 0 : i64, tpu.core_type = #tpu.core_type<tc>, window_params = [{transform_indices = @transform_0, window_bounds = array<i64: 16, 4>}, {pipeline_mode = #tpu.pipeline_mode<synchronous>, transform_indices = @transform_1, window_bounds = array<i64: 4, 16, 32>}, {transform_indices = @transform_2, window_bounds = array<i64: 16, 32>}]} {
    %c0 = arith.constant 0 : index
    %c0_0 = arith.constant 0 : index
    %0 = vector.load %arg1[%c0, %c0_0] : memref<16x4xi32, #tpu.memory_space<vmem>>, vector<16x4xi32>
    %1 = tpu.iota {dimensions = array<i32: 1>} : vector<16x16xi32>
    %cst = arith.constant 0.000000e+00 : f32
    %2 = vector.broadcast %cst : f32 to vector<16x32xf32>
    %3 = vector.extract_strided_slice %0 {offsets = [0, 0], sizes = [16, 1], strides = [1, 1]} : vector<16x4xi32> to vector<16x1xi32>
    %4 = vector.broadcast %3 : vector<16x1xi32> to vector<16x16xi32>
    %5 = arith.cmpi eq, %1, %4 : vector<16x16xi32>
    %6 = arith.extui %5 : vector<16x16xi1> to vector<16x16xi32>
    %7 = arith.sitofp %6 : vector<16x16xi32> to vector<16x16xf32>
    %c0_1 = arith.constant 0 : index
    %c0_2 = arith.constant 0 : index
    %c0_3 = arith.constant 0 : index
    %8 = vector.load %arg2[%c0_1, %c0_2, %c0_3] : memref<4x16x32xf32, #tpu.memory_space<vmem>>, vector<1x16x32xf32>
    %9 = vector.shape_cast %8 : vector<1x16x32xf32> to vector<16x32xf32>
    %cst_4 = arith.constant dense<0.000000e+00> : vector<16x32xf32>
    %10 = tpu.matmul %7, %9, %cst_4 {dimension_numbers = #tpu.dot_dimension_numbers<[1], [0], [0], [1], [0, 0, 1, 1], [], []>} : vector<16x16xf32>, vector<16x32xf32>, vector<16x32xf32> -> vector<16x32xf32>
    %11 = arith.addf %2, %10 : vector<16x32xf32>
    %12 = vector.extract_strided_slice %0 {offsets = [0, 1], sizes = [16, 1], strides = [1, 1]} : vector<16x4xi32> to vector<16x1xi32>
    %13 = vector.broadcast %12 : vector<16x1xi32> to vector<16x16xi32>
    %14 = arith.cmpi eq, %1, %13 : vector<16x16xi32>
    %15 = arith.extui %14 : vector<16x16xi1> to vector<16x16xi32>
    %16 = arith.sitofp %15 : vector<16x16xi32> to vector<16x16xf32>
    %c1 = arith.constant 1 : index
    %c0_5 = arith.constant 0 : index
    %c0_6 = arith.constant 0 : index
    %17 = vector.load %arg2[%c1, %c0_5, %c0_6] : memref<4x16x32xf32, #tpu.memory_space<vmem>>, vector<1x16x32xf32>
    %18 = vector.shape_cast %17 : vector<1x16x32xf32> to vector<16x32xf32>
    %cst_7 = arith.constant dense<0.000000e+00> : vector<16x32xf32>
    %19 = tpu.matmul %16, %18, %cst_7 {dimension_numbers = #tpu.dot_dimension_numbers<[1], [0], [0], [1], [0, 0, 1, 1], [], []>} : vector<16x16xf32>, vector<16x32xf32>, vector<16x32xf32> -> vector<16x32xf32>
    %20 = arith.addf %11, %19 : vector<16x32xf32>
    %21 = vector.extract_strided_slice %0 {offsets = [0, 2], sizes = [16, 1], strides = [1, 1]} : vector<16x4xi32> to vector<16x1xi32>
    %22 = vector.broadcast %21 : vector<16x1xi32> to vector<16x16xi32>
    %23 = arith.cmpi eq, %1, %22 : vector<16x16xi32>
    %24 = arith.extui %23 : vector<16x16xi1> to vector<16x16xi32>
    %25 = arith.sitofp %24 : vector<16x16xi32> to vector<16x16xf32>
    %c2 = arith.constant 2 : index
    %c0_8 = arith.constant 0 : index
    %c0_9 = arith.constant 0 : index
    %26 = vector.load %arg2[%c2, %c0_8, %c0_9] : memref<4x16x32xf32, #tpu.memory_space<vmem>>, vector<1x16x32xf32>
    %27 = vector.shape_cast %26 : vector<1x16x32xf32> to vector<16x32xf32>
    %cst_10 = arith.constant dense<0.000000e+00> : vector<16x32xf32>
    %28 = tpu.matmul %25, %27, %cst_10 {dimension_numbers = #tpu.dot_dimension_numbers<[1], [0], [0], [1], [0, 0, 1, 1], [], []>} : vector<16x16xf32>, vector<16x32xf32>, vector<16x32xf32> -> vector<16x32xf32>
    %29 = arith.addf %20, %28 : vector<16x32xf32>
    %30 = vector.extract_strided_slice %0 {offsets = [0, 3], sizes = [16, 1], strides = [1, 1]} : vector<16x4xi32> to vector<16x1xi32>
    %31 = vector.broadcast %30 : vector<16x1xi32> to vector<16x16xi32>
    %32 = arith.cmpi eq, %1, %31 : vector<16x16xi32>
    %33 = arith.extui %32 : vector<16x16xi1> to vector<16x16xi32>
    %34 = arith.sitofp %33 : vector<16x16xi32> to vector<16x16xf32>
    %c3 = arith.constant 3 : index
    %c0_11 = arith.constant 0 : index
    %c0_12 = arith.constant 0 : index
    %35 = vector.load %arg2[%c3, %c0_11, %c0_12] : memref<4x16x32xf32, #tpu.memory_space<vmem>>, vector<1x16x32xf32>
    %36 = vector.shape_cast %35 : vector<1x16x32xf32> to vector<16x32xf32>
    %cst_13 = arith.constant dense<0.000000e+00> : vector<16x32xf32>
    %37 = tpu.matmul %34, %36, %cst_13 {dimension_numbers = #tpu.dot_dimension_numbers<[1], [0], [0], [1], [0, 0, 1, 1], [], []>} : vector<16x16xf32>, vector<16x32xf32>, vector<16x32xf32> -> vector<16x32xf32>
    %38 = arith.addf %29, %37 : vector<16x32xf32>
    %c0_14 = arith.constant 0 : index
    %c0_15 = arith.constant 0 : index
    %39 = vector.load %arg3[%c0_14, %c0_15] : memref<16x32xf32, #tpu.memory_space<vmem>>, vector<16x32xf32>
    tpu.vector_store %arg3[%c0_14, %c0_15], %38 {strides = array<i32>} : memref<16x32xf32, #tpu.memory_space<vmem>>, vector<16x32xf32>,
    return
  }
  func.func @transform_0(%arg0: i32) -> (i32, i32) {
    %c0_i32 = arith.constant 0 : i32
    %c0_i32_0 = arith.constant 0 : i32
    return %arg0, %c0_i32 : i32, i32
  }
  func.func @transform_1(%arg0: i32) -> (i32, i32, i32) {
    %c0_i32 = arith.constant 0 : i32
    %c0_i32_0 = arith.constant 0 : i32
    %c0_i32_1 = arith.constant 0 : i32
    %c0_i32_2 = arith.constant 0 : i32
    return %c0_i32, %c0_i32_0, %c0_i32_1 : i32, i32, i32
  }
  func.func @transform_2(%arg0: i32) -> (i32, i32) {
    %c0_i32 = arith.constant 0 : i32
    %c0_i32_0 = arith.constant 0 : i32
    return %arg0, %c0_i32 : i32, i32
  }
}

</mosaic_0001>

<bundles_post_ra>
// kernel: tpu_custom_call.1
= control target key start
LH: loop header
LB: loop body
LE: loop exit
PB: predicated region body
PF: predicated region fallthrough
CT: control target
= control target key end

     0   :  { %7 = vsyncpa [#allocation3], 0  ;;  %s652_s0 = inlined_call_operand.vmem [shape: s32[16,4], index: 0, kind: input, shape index: {}]   ;;  %s653_s1 = inlined_call_operand.hbm [shape: f32[4,16,32], index: 1, kind: input, shape index: {}]   ;;  %s654_s2 = inlined_call_operand.hbm [shape: f32[16,32], index: 2, kind: output, shape index: {}]  }
   0x1   :  { %8 = vsyncpa [#allocation4], 0  ;;  %s584_s9 = smov [#allocation2]   ;;  %s536_s13 = scalar_lea.hbm %s653_s1, 1024 }
   0x2   :  { %s16_s10 = sshll.u32 %s584_s9, 4  ;;  %p537_p0 = scmp.ne.s32.totalorder %s653_s1, %s536_s13  ;;  %s17_s10 = int_to_ptr.vmem [resolvable:$true] %s16_s10 }
   0x3   :  { %p540_p1 = scmp.lt.u32.totalorder %s536_s13, %s653_s1 }
   0x5   :  { %p542_p2 = pnand %p540_p1, %p537_p0 }
   0x7   :  { %545 = shalt.err (!%p542_p2)
}
   0x8   :  { %s546_s18 = scalar_lea.vmem %s17_s10, 1024  ;;  %p551_p4 = scmp.lt.s32.totalorder %s17_s10, %s17_s10 }
   0x9   :  { %p547_p3 = scmp.ne.s32.totalorder %s17_s10, %s546_s18  ;;  %p552_p5 = scmp.lt.s32.totalorder %s546_s18, %s546_s18 }
   0xb   :  { %p553_p6 = por %p552_p5, %p551_p4 }
   0xd   :  { %p554_p7 = pnand %p553_p6, %p547_p3 }
   0xf   :  { %557 = shalt.err (!%p554_p7)
}
  0x10   :  { %s585_s19 = smov 128   ;;  %s586_s20 = smov 8  }
  0x11   :  { %22 = dma.hbm_to_vmem [thread:$0]  %s653_s1, 1024, %s17_s10, [#allocation3], %s585_s19, %s585_s19, %s586_s20  }
  0x12   :  { %580 = dma.done.wait [#allocation3], 1024  }
  0x13   :  { %581 = vsyncadd [#allocation3], 4294966272  ;;  %v587_v0 = vmov 1   ;;  %v27_v1 = vld [vmem:[%s652_s0 + $0x8] sm:$0xff]  ;;  %v26_v2 = vld [vmem:[%s652_s0] sm:$0xff]  ;;  %v588_v9 = vmov 2   ;;  %v28_v18 = vlaneseq }
  0x14   :  { %531 = vset.pattern.permute.xlu1 %v587_v0  ;;  %529 = vset.pattern.permute.xlu0 %v587_v0  ;;  %v57_v3 = vld [vmem:[#allocation2 + $0x10] sm:$0xff]  ;;  %v58_v4 = vld [vmem:[#allocation2 + $0x18] sm:$0xff]  ;;  %v235_v6 = vld [vmem:[#allocation2 + $0x20] sm:$0xff]  ;;  %v589_v10 = vmov 0   ;;  %v590_v11 = vmov 3   ;;  %vm59_vm0 = vcmask 130048  }
  0x15   :  { %48 = vperm.xlu1 %531, %v27_v1   ;;  %45 = vperm.xlu0 %529, %v26_v2   ;;  %v498_v5 = vpack.c.bf16 %v58_v4, %v57_v3  ;;  %v236_v7 = vld [vmem:[#allocation2 + $0x28] sm:$0xff]  ;;  %v42_v12 = vld [vmem:[#allocation2] sm:$0xff]  ;;  %v333_v15 = vld [vmem:[#allocation2 + $0x30] sm:$0xff]  ;;  %v29_v19 = vand.u32 127, %v28_v18  ;;  %v591_v22 = vmov 0.0   ;;  %s592_s0 = smov [#allocation5]  }
  0x16   :  { %v506_v8 = vpack.c.bf16 %v236_v7, %v235_v6  ;;  %v43_v13 = vld [vmem:[#allocation2 + $0x8] sm:$0xff]  ;;  %v334_v16 = vld [vmem:[#allocation2 + $0x38] sm:$0xff]  ;;  %s426_s1 = sshll.u32 %s592_s0, 4  ;;  %vm418_vm9 = vcmask 261120   ;;  %s427_s1 = int_to_ptr.vmem [resolvable:$true] %s426_s1 }
  0x17   :  { %499 = vmatprep.subr.bf16.mxu1 %v498_v5  ;;  %v502_v14 = vpack.c.bf16 %v43_v13, %v42_v12  ;;  %v510_v17 = vpack.c.bf16 %v334_v16, %v333_v15  ;;  %s558_s27 = scalar_lea.vmem %s427_s1, 256  ;;  %p563_p9 = scmp.lt.s32.totalorder %s427_s1, %s427_s1 }
  0x18   :  { %501 = vmatpush3.bf16.msra.mxu1 %v498_v5  ;;  %507 = vmatprep.subr.bf16.mxu0 %v506_v8  ;;  %p559_p8 = scmp.ne.s32.totalorder %s427_s1, %s558_s27  ;;  %p564_p10 = scmp.lt.s32.totalorder %s558_s27, %s558_s27 }
  0x19   :  { %532 = vset.pattern.permute.xlu1 %v588_v9  ;;  %530 = vset.pattern.permute.xlu0 %v588_v9 }
  0x1a   :  { %226 = vperm.xlu1 %532, %v27_v1   ;;  %223 = vperm.xlu0 %530, %v26_v2   ;;  %p565_p11 = por %p564_p10, %p563_p9 }
  0x1b   :  { %509 = vmatpush3.bf16.msra.mxu0 %v506_v8  ;;  %503 = vmatprep.subr.bf16.mxu1 %v502_v14 }
  0x1c   :  { %511 = vmatprep.subr.bf16.mxu0 %v510_v17  ;;  %p566_p12 = pnand %p565_p11, %p559_p8 }
  0x1e   :  { %533 = vset.pattern.permute.xlu1 %v589_v10  ;;  %534 = vset.pattern.permute.xlu0 %v590_v11 }
  0x1f   :  { %31 = vperm.xlu1 %533, %v26_v2   ;;  %321 = vperm.xlu0 %534, %v26_v2  }
  0x23   :  { %34 = vperm.xlu1 %533, %v27_v1  }
  0x27   :  { %535 = vset.pattern.permute.xlu1 %v590_v11 }
  0x28   :  { %324 = vperm.xlu1 %535, %v27_v1  }
  0x94   :  { %v49_v20 = vpop.permute.xlu1 %48  ;;  %v46_v21 = vpop.permute.xlu0 %45 }
  0x95   :  { %vm51_vm1 = vcmp.eq.s32.totalorder %v29_v19, %v49_v20  ;;  %vm50_vm2 = vcmp.eq.s32.totalorder %v29_v19, %v46_v21 }
  0x96   :  { %v441_v23 = vsel %vm51_vm1, 1.0, %v591_v22  ;;  %v440_v24 = vsel %vm50_vm2, 1.0, %v591_v22 }
  0x97   :  { %474 = vmatprep.mubr.msk.f32.mxu1 %vm59_vm0, %v440_v24 }
  0x98   :  { %475 = vmatmul.mubr.msk.f32.vlgmr.msra.gmra.mrb[0].mxu1 %vm59_vm0, %v441_v23 }
  0x99   :  { %v227_v25 = vpop.permute.xlu1 %226  ;;  %v224_v26 = vpop.permute.xlu0 %223  ;;  %505 = vmatpush3.bf16.msra.mxu1 %v502_v14 }
  0x9a   :  { %vm229_vm3 = vcmp.eq.s32.totalorder %v29_v19, %v227_v25  ;;  %vm228_vm4 = vcmp.eq.s32.totalorder %v29_v19, %v224_v26 }
  0x9b   :  { %v447_v27 = vsel %vm229_vm3, 1.0, %v591_v22  ;;  %v446_v28 = vsel %vm228_vm4, 1.0, %v591_v22 }
  0x9c   :  { %488 = vmatprep.mubr.msk.f32.mxu0 %vm59_vm0, %v446_v28 }
  0x9d   :  { %489 = vmatmul.mubr.msk.f32.vlgmr.msra.gmra.mrb[0].mxu0 %vm59_vm0, %v447_v27 }
  0x9e   :  { %v32_v29 = vpop.permute.xlu1 %31  ;;  %513 = vmatpush3.bf16.msra.mxu0 %v510_v17  ;;  %v322_v30 = vpop.permute.xlu0 %321 }
  0x9f   :  { %vm36_vm5 = vcmp.eq.s32.totalorder %v29_v19, %v32_v29  ;;  %vm326_vm6 = vcmp.eq.s32.totalorder %v29_v19, %v322_v30 }
  0xa0   :  { %v438_v31 = vsel %vm36_vm5, 1.0, %v591_v22  ;;  %v450_v32 = vsel %vm326_vm6, 1.0, %v591_v22 }
  0xa1   :  { %481 = vmatprep.mubr.msk.f32.mxu1 %vm59_vm0, %v438_v31  ;;  %495 = vmatprep.mubr.msk.f32.mxu0 %vm59_vm0, %v450_v32 }
  0xa2   :  { %v35_v33 = vpop.permute.xlu1 %34 }
  0xa3   :  { %vm37_vm7 = vcmp.eq.s32.totalorder %v29_v19, %v35_v33 }
  0xa4   :  { %v439_v34 = vsel %vm37_vm7, 1.0, %v591_v22 }
  0xa5   :  { %482 = vmatmul.mubr.msk.f32.vlgmr.msra.gmra.mrb[0].mxu1 %vm59_vm0, %v439_v34 }
  0xa7   :  { %v325_v35 = vpop.permute.xlu1 %324 }
  0xa8   :  { %vm327_vm8 = vcmp.eq.s32.totalorder %v29_v19, %v325_v35 }
  0xa9   :  { %v451_v36 = vsel %vm327_vm8, 1.0, %v591_v22 }
  0xaa   :  { %496 = vmatmul.mubr.msk.f32.vlgmr.msra.gmra.mrb[0].mxu0 %vm59_vm0, %v451_v36 }
 0x178   :  { %v483_v37 = vpop.f32.mrb[0].mxu1 }
 0x179   :  { %v213_v38 = vpop.f32.mrb[1].mxu1 }
 0x17d   :  { %v497_v39 = vpop.f32.mrb[0].mxu0 }
 0x17e   :  { %v514_v40 = vadd.f32 %v497_v39, %v483_v37  ;;  %v407_v41 = vpop.f32.mrb[1].mxu0 }
 0x17f   :  { %v515_v42 = vadd.f32 %v407_v41, %v213_v38 }
 0x180   :  { %420 = vst.msk [vmem:[#allocation5 + $0x8] sm:$0xff] %vm418_vm9, %v514_v40 }
 0x181   :  { %419 = vst.msk [vmem:[#allocation5] sm:$0xff] %vm418_vm9, %v515_v42 }
 0x182   :  { %569 = shalt.err (!%p566_p12)
}
 0x183   :  { %s570_s30 = scalar_lea.hbm %s654_s2, 256 }
 0x184   :  { %p571_p13 = scmp.ne.s32.totalorder %s654_s2, %s570_s30  ;;  %p574_p0 = scmp.lt.u32.totalorder %s570_s30, %s654_s2 }
 0x186   :  { %p576_p1 = pnand %p574_p0, %p571_p13 }
 0x188   :  { %579 = shalt.err (!%p576_p1)
}
 0x189   :  { %432 = dma.vmem_to_hbm [thread:$0]  %s427_s1, 256, %s654_s2, [#allocation4], %s585_s19, %s585_s19, %s586_s20  }
 0x18a   :  { %582 = dma.done.wait [#allocation4], 256  }
 0x18b   :  { %583 = vsyncadd [#allocation4], 4294967040 }
 0x18c   :  { %436 = vsyncpa [#allocation3], 1 }
 0x18d   :  { %437 = vsyncpa [#allocation4], 1 }

</bundles_post_ra>
